<compile_context>
chip_gen: v7x
topology: tpu7x:2x2x1
jax: 0.10.0
libtpu: 0.0.40
codegen_flags: <defaults>
</compile_context>

<pallas_src>
import math
import numpy as np
import jax
import jax.numpy as jnp
from jax import lax
from jax.experimental import pallas as pl
from jax.experimental.pallas import tpu as pltpu

_MiB = 1024 * 1024


def _round_up(x, m):
    return ((x + m - 1) // m) * m


def _vmem_capacity_bytes():
    """Physical VMEM per core (v5e/v6e: 128 MiB, v7x: 64 MiB)."""
    try:
        info = pltpu.get_tpu_info()
        cap = getattr(info, "vmem_capacity_bytes", None)
        if cap:
            return int(cap)
    except Exception:
        pass
    return 64 * _MiB   # conservative default (v7x per-TensorCore VMEM)


# ---------------------------------------------------------------------------
# Pallas kernel: one (TQ, F) gathered output tile per grid step.
#   out_ref[q, :] = table[idx[q], :]   via   onehot(TQ, L) @ table(L, F)  (MXU)
# ---------------------------------------------------------------------------
def _gather_onehot_kernel(idx_ref, table_hbm, out_ref, table_vmem, sem):
    # idx_ref:    (TQ, 1) int32 VMEM tile of row indices for this grid step.
    # table_hbm:  (L, F) table left in HBM (memory_space=pl.ANY).
    # table_vmem: (L, F) VMEM scratch; filled once on step 0, reused afterwards
    #             (grid is sequential: dimension_semantics=("arbitrary",)).
    # Padded idx entries are -1 -> all-zero one-hot row -> zero output row
    # (sliced off by the caller; never consume the padded slab directly).
    @pl.when(pl.program_id(0) == 0)
    def _():
        cp = pltpu.make_async_copy(table_hbm, table_vmem, sem)
        cp.start()
        cp.wait()

    tq = out_ref.shape[0]
    l = table_vmem.shape[0]
    onehot = (idx_ref[...] == lax.broadcasted_iota(jnp.int32, (tq, l), 1)
              ).astype(table_vmem.dtype)
    out_ref[...] = jnp.dot(
        onehot, table_vmem[...],
        precision=lax.Precision.HIGHEST,          # exact f32 row copies
        preferred_element_type=jnp.float32,
    ).astype(out_ref.dtype)


def gather_rows(table, idx, *, tq=512):
    """Row gather `table[idx, :]` with a Pallas TPU one-hot-matmul kernel."""
    L, F = (int(s) for s in table.shape)
    n_out = int(idx.shape[0])
    if n_out == 0:
        return table[:0]

    itemsize = jnp.dtype(table.dtype).itemsize
    lane = 128
    F_lane = _round_up(F, lane)
    L_sub = _round_up(L, 8)
    L_lane = _round_up(L, lane)

    # Tile height: multiple of 8, large (amortizes ~0.35us/step), but capped so
    # the (TQ, L) one-hot intermediate stays modest for large tables.
    TQ = min(int(tq), _round_up(n_out, 8))
    tq_cap = max(8, ((8 * _MiB) // max(L_lane * 4, 1)) // 8 * 8)
    TQ = max(8, min(TQ, tq_cap))
    n_tiles = -(-n_out // TQ)
    n_out_pad = n_tiles * TQ

    # VMEM accounting: single-buffered resident table + double-buffered idx/out
    # tiles + one-hot intermediate, against the per-generation capacity.
    capacity = _vmem_capacity_bytes()
    table_bytes = L_sub * F_lane * itemsize        # VMEM scratch, exactly 1 buffer
    idx_bytes = 2 * TQ * lane * 4                  # (TQ,1) i32 tile, lane-padded, x2
    out_bytes = 2 * TQ * F_lane * itemsize         # output tile, x2
    onehot_bytes = TQ * L_lane * 4                 # in-kernel intermediate
    needed = table_bytes + idx_bytes + out_bytes + onehot_bytes
    budget = capacity - 16 * _MiB                  # Mosaic internal-scratch headroom
    if needed > budget:
        # TODO(synk): manual-DMA row gather (HBM-resident table, scalar-prefetched
        # indices, 8-16 outstanding row copies) for tables that exceed VMEM
        # (matters most on v7x's 64 MiB); plain XLA gather is the safe fallback.
        return jnp.take(table, idx, axis=0)

    # Pad indices with -1: padded rows produce an all-zero one-hot row, so the
    # padded tail of the output slab is zeros and is sliced off below.
    idx_col = jnp.pad(idx.astype(jnp.int32), (0, n_out_pad - n_out),
                      constant_values=-1).reshape(n_out_pad, 1)

    out = pl.pallas_call(
        _gather_onehot_kernel,
        out_shape=jax.ShapeDtypeStruct((n_out_pad, F), table.dtype),
        grid_spec=pltpu.PrefetchScalarGridSpec(
            num_scalar_prefetch=0,
            grid=(n_tiles,),
            in_specs=[
                pl.BlockSpec((TQ, 1), lambda i: (i, 0)),   # index column tile
                pl.BlockSpec(memory_space=pl.ANY),         # table stays in HBM
            ],
            out_specs=pl.BlockSpec((TQ, F), lambda i: (i, 0)),
            scratch_shapes=[
                pltpu.VMEM((L, F), table.dtype),           # resident table (x1)
                pltpu.SemaphoreType.DMA(()),
            ],
        ),
        compiler_params=pltpu.CompilerParams(
            # Sequential grid: step 0 loads the table into the VMEM scratch and
            # later steps reuse it; also avoids duplicating the dominant table
            # DMA across v7x's two TensorCores.
            dimension_semantics=("arbitrary",),
            vmem_limit_bytes=int(min(capacity - 8 * _MiB,
                                     max(32 * _MiB, needed + 8 * _MiB))),
        ),
    )(idx_col, table)

    return out if n_out_pad == n_out else out[:n_out]


# ---------------------------------------------------------------------------
# Module-level wrapper reproducing NViewRandomSplitting.forward
# ---------------------------------------------------------------------------
def _split_sizes(masking_ratio, length):
    """Replicates get_two_idx / get_n_idx chunk sizing."""
    n = len(masking_ratio)
    if n == 2:
        s0 = int(masking_ratio[0] * length)
        return [s0, length - s0]
    sizes = [math.floor(r * length) for r in masking_ratio]
    sizes[-1] = length - sum(sizes[:-1])
    return sizes


def nview_random_splitting(inst, key, masking_ratio=(0.7, 0.3), fixed_order=False):
    # NOTE: uses jax.random, so the random stream is not bit-identical to
    # torch.randperm, only semantically equivalent (a uniform permutation).
    assert abs(sum(masking_ratio) - 1.0) < 1e-6
    n_views = len(masking_ratio)
    embeddings = inst["embeddings"]
    coords = inst["coords"]
    assert len(embeddings) == n_views, (
        f"length of embedding is {len(embeddings)}, n_views is {n_views}")

    length = int(embeddings[0].shape[0])
    key_perm, key_order = jax.random.split(key)

    # Host-materialize the view-assignment order FIRST (it determines static
    # output shapes), so host sync does not sit between gather launches.
    if fixed_order:
        asgmt_order = list(range(n_views))
    else:
        asgmt_order = [int(v) for v in np.asarray(
            jax.random.permutation(key_order, n_views))]

    # torch.randperm(length) equivalent
    all_idx = jax.random.permutation(key_perm, length).astype(jnp.int32)
    sizes = _split_sizes(masking_ratio, length)
    starts = np.concatenate(([0], np.cumsum(sizes)[:-1])).astype(int)
    idxs = [all_idx[int(s):int(s) + int(sz)] for s, sz in zip(starts, sizes)]

    new_embs, new_coords = [], []
    for i in range(n_views):
        sel = idxs[asgmt_order[i]]
        # Embeddings (the HBM-heavy part) go through the Pallas gather; coords
        # are ~8 bytes/row, so a plain gather keeps them off the kernel path
        # without any full-table concat/pad traffic.
        new_embs.append(gather_rows(embeddings[i], sel))
        new_coords.append(jnp.take(coords[i], sel, axis=0))

    out = dict(inst)
    out["embeddings"] = new_embs
    out["coords"] = new_coords
    # stash selections so callers/tests can verify the gather
    out["_selected_idx"] = [idxs[asgmt_order[i]] for i in range(n_views)]
    return out


# ---------------------------------------------------------------------------
if __name__ == "__main__":
    key = jax.random.PRNGKey(0)
    k_e0, k_e1, k_c0, k_c1, k_split, k_big, k_bidx = jax.random.split(key, 7)

    # --- small end-to-end test of the module semantics --------------------
    L, D, C = 16, 32, 2  # tokens, embedding dim, coord dim
    inst = {
        "embeddings": [
            jax.random.normal(k_e0, (L, D), dtype=jnp.float32),
            jax.random.normal(k_e1, (L, D), dtype=jnp.float32),
        ],
        "coords": [
            jax.random.normal(k_c0, (L, C), dtype=jnp.float32),
            jax.random.normal(k_c1, (L, C), dtype=jnp.float32),
        ],
    }

    out = nview_random_splitting(inst, k_split, masking_ratio=(0.7, 0.3),
                                 fixed_order=False)
    jax.block_until_ready(out["embeddings"])
    jax.block_until_ready(out["coords"])

    ok = True
    for i in range(2):
        sel = out["_selected_idx"][i]
        ref_e = jnp.take(inst["embeddings"][i], sel, axis=0)
        ref_c = jnp.take(inst["coords"][i], sel, axis=0)
        ok &= bool(jnp.allclose(out["embeddings"][i], ref_e, rtol=1e-5, atol=1e-5))
        ok &= bool(jnp.allclose(out["coords"][i], ref_c, rtol=1e-5, atol=1e-5))
        ok &= out["embeddings"][i].shape == (sel.shape[0], D)
        ok &= out["coords"][i].shape == (sel.shape[0], C)

    # --- extra check: multi-tile / row-padded path of the gather kernel ---
    Lb, Fb = 601, 40                      # non-aligned table dims, 2 tiles
    big_table = jax.random.normal(k_big, (Lb, Fb), dtype=jnp.float32)
    big_idx = jax.random.permutation(k_bidx, Lb)[:420].astype(jnp.int32)
    g_big = gather_rows(big_table, big_idx, tq=256)
    jax.block_until_ready(g_big)
    ok &= bool(jnp.allclose(g_big, jnp.take(big_table, big_idx, axis=0),
                            rtol=1e-5, atol=1e-5))
    ok &= g_big.shape == (420, Fb)

    assert ok, "Pallas gather mismatch vs reference"
    print("KERNEL_OK")
</pallas_src>

<mosaic_0001>
module attributes {stable_mosaic.version = 11 : i64} {
  func.func @_gather_onehot_kernel(%arg0: i32, %arg1: memref<16x1xi32, #tpu.memory_space<vmem>>, %arg2: memref<16x32xf32, #tpu.memory_space<any>>, %arg3: memref<16x32xf32, #tpu.memory_space<vmem>>, %arg4: memref<16x32xf32, #tpu.memory_space<vmem>>, %arg5: memref<!tpu.dma_semaphore, #tpu.memory_space<semaphore_mem>>) attributes {dimension_semantics = [#tpu.dimension_semantics<arbitrary>], iteration_bounds = array<i64: 1>, scalar_prefetch = 0 : i64, scratch_operands = 2 : i64, tpu.core_type = #tpu.core_type<tc>, window_params = [{transform_indices = @transform_0, window_bounds = array<i64: 16, 1>}, {}, {transform_indices = @transform_2, window_bounds = array<i64: 16, 32>}]} {
    %c0_i32 = arith.constant 0 : i32
    %0 = arith.cmpi eq, %arg0, %c0_i32 : i32
    %1 = arith.extui %0 : i1 to i32
    %c0_i32_0 = arith.constant 0 : i32
    %2 = arith.cmpi ne, %1, %c0_i32_0 : i32
    scf.if %2 {
      tpu.enqueue_dma source(%arg2 : memref<16x32xf32, #tpu.memory_space<any>>) target(%arg4 : memref<16x32xf32, #tpu.memory_space<vmem>>) target_semaphore(%arg5 : memref<!tpu.dma_semaphore, #tpu.memory_space<semaphore_mem>>)
      tpu.wait_dma2 semaphore(%arg5 : memref<!tpu.dma_semaphore, #tpu.memory_space<semaphore_mem>>) src(%arg2 : memref<16x32xf32, #tpu.memory_space<any>>) dst(%arg4 : memref<16x32xf32, #tpu.memory_space<vmem>>)
    } else {
    }
    %c0 = arith.constant 0 : index
    %c0_1 = arith.constant 0 : index
    %3 = vector.load %arg1[%c0, %c0_1] : memref<16x1xi32, #tpu.memory_space<vmem>>, vector<16x1xi32>
    %4 = tpu.iota {dimensions = array<i32: 1>} : vector<16x16xi32>
    %5 = vector.broadcast %3 : vector<16x1xi32> to vector<16x16xi32>
    %6 = arith.cmpi eq, %5, %4 : vector<16x16xi32>
    %7 = arith.extui %6 : vector<16x16xi1> to vector<16x16xi32>
    %8 = arith.sitofp %7 : vector<16x16xi32> to vector<16x16xf32>
    %c0_2 = arith.constant 0 : index
    %c0_3 = arith.constant 0 : index
    %9 = vector.load %arg4[%c0_2, %c0_3] : memref<16x32xf32, #tpu.memory_space<vmem>>, vector<16x32xf32>
    %cst = arith.constant dense<0.000000e+00> : vector<16x32xf32>
    %10 = tpu.matmul %8, %9, %cst {dimension_numbers = #tpu.dot_dimension_numbers<[1], [0], [0], [1], [0, 0, 1, 1], [], []>, precision = #tpu.contract_precision<fp32>} : vector<16x16xf32>, vector<16x32xf32>, vector<16x32xf32> -> vector<16x32xf32>
    %c0_4 = arith.constant 0 : index
    %c0_5 = arith.constant 0 : index
    %11 = vector.load %arg3[%c0_4, %c0_5] : memref<16x32xf32, #tpu.memory_space<vmem>>, vector<16x32xf32>
    tpu.vector_store %arg3[%c0_4, %c0_5], %10 {strides = array<i32>} : memref<16x32xf32, #tpu.memory_space<vmem>>, vector<16x32xf32>,
    return
  }
  func.func @transform_0(%arg0: i32) -> (i32, i32) {
    %c0_i32 = arith.constant 0 : i32
    %c0_i32_0 = arith.constant 0 : i32
    return %arg0, %c0_i32 : i32, i32
  }
  func.func @transform_2(%arg0: i32) -> (i32, i32) {
    %c0_i32 = arith.constant 0 : i32
    %c0_i32_0 = arith.constant 0 : i32
    return %arg0, %c0_i32 : i32, i32
  }
}

</mosaic_0001>

<bundles_post_ra>
// kernel: tpu_custom_call.1
= control target key start
LH: loop header
LB: loop body
LE: loop exit
PB: predicated region body
PF: predicated region fallthrough
CT: control target
= control target key end

     0   :  { %7 = vsyncpa [#allocation5], 0  ;;  %s814_s0 = inlined_call_operand.vmem [shape: s32[16,1], index: 0, kind: input, shape index: {}]   ;;  %s815_s1 = inlined_call_operand.vmem [shape: f32[16,32], index: 1, kind: input, shape index: {}]   ;;  %s816_s2 = inlined_call_operand.hbm [shape: f32[16,32], index: 2, kind: output, shape index: {}]  }
   0x1   :  { %v46_v0 = vld [vmem:[%s815_s1] sm:$0xff]  ;;  %v48_v1 = vld [vmem:[%s815_s1 + $0x8] sm:$0xff] }
   0x2   :  { %57 = vsyncadd [#allocation3], 256 }
   0x3   :  { %758 = dma.done.wait [#allocation3], 256 }
   0x4   :  { %759 = vsyncadd [#allocation3], 4294967040  ;;  %v762_v2 = vmov 0   ;;  %v61_v3 = vld [vmem:[%s814_s0] sm:$0xff]  ;;  %v62_v4 = vld [vmem:[%s814_s0 + $0x8] sm:$0xff]  ;;  %v87_v5 = vand.u32 4294901760, %v46_v0  ;;  %v63_v19 = vlaneseq }
   0x5   :  { %735 = vset.pattern.permute.xlu0 %v762_v2  ;;  %v90_v6 = vand.u32 4294901760, %v48_v1  ;;  %vm79_vm0 = vcmask 130048   ;;  %v763_v22 = vmov 0.0   ;;  %s764_s0 = smov [#allocation4]   ;;  %vm588_vm3 = vcmask 261120  }
   0x6   :  { %66 = vperm.xlu0 %735, %v61_v3   ;;  %v175_v8 = vsub.f32 %v46_v0, %v87_v5  ;;  %v64_v20 = vand.u32 127, %v63_v19  ;;  %s596_s1 = sshll.u32 %s764_s0, 4  ;;  %s597_s1 = int_to_ptr.vmem [resolvable:$true] %s596_s1 }
   0x7   :  { %v696_v7 = vpack.c.bf16 %v90_v6, %v87_v5  ;;  %v182_v9 = vsub.f32 %v48_v1, %v90_v6  ;;  %s736_s17 = scalar_lea.vmem %s597_s1, 256  ;;  %p741_p1 = scmp.lt.s32.totalorder %s597_s1, %s597_s1 }
   0x8   :  { %v176_v10 = vand.u32 4294901760, %v175_v8  ;;  %p737_p0 = scmp.ne.s32.totalorder %s597_s1, %s736_s17  ;;  %p742_p2 = scmp.lt.s32.totalorder %s736_s17, %s736_s17 }
   0x9   :  { %709 = vmatprep.subr.bf16.mxu0 %v696_v7  ;;  %697 = vmatprep.subr.bf16.mxu1 %v696_v7  ;;  %v183_v11 = vand.u32 4294901760, %v182_v9  ;;  %v704_v18 = vpack.c.bf16 %v182_v9, %v175_v8 }
   0xa   :  { %69 = vperm.xlu0 %735, %v62_v4   ;;  %711 = vmatpush3.bf16.msra.mxu0 %v696_v7  ;;  %v177_v12 = vsub.f32 %v175_v8, %v176_v10  ;;  %p743_p3 = por %p742_p2, %p741_p1 }
   0xb   :  { %699 = vmatpush3.bf16.msra.mxu1 %v696_v7  ;;  %v184_v13 = vsub.f32 %v182_v9, %v183_v11  ;;  %v712_v14 = vpack.c.bf16 %v183_v11, %v176_v10 }
   0xc   :  { %v178_v15 = vand.u32 4294901760, %v177_v12  ;;  %p744_p4 = pnand %p743_p3, %p737_p0 }
   0xd   :  { %v185_v16 = vand.u32 4294901760, %v184_v13  ;;  %713 = vmatprep.subr.bf16.mxu0 %v712_v14 }
   0xf   :  { %v700_v17 = vpack.c.bf16 %v185_v16, %v178_v15 }
  0x11   :  { %701 = vmatprep.subr.bf16.mxu1 %v700_v17 }
  0x85   :  { %v67_v21 = vpop.permute.xlu0 %66 }
  0x86   :  { %vm71_vm1 = vcmp.eq.s32.totalorder %v67_v21, %v64_v20 }
  0x87   :  { %v621_v23 = vsel %vm71_vm1, 1.0, %v763_v22 }
  0x88   :  { %v81_v24 = vsel %vm79_vm0, %v621_v23, 0 }
  0x89   :  { %v154_v25 = vsub.f32 %v81_v24, %v81_v24  ;;  %v70_v26 = vpop.permute.xlu0 %69 }
  0x8a   :  { %vm72_vm2 = vcmp.eq.s32.totalorder %v70_v26, %v64_v20 }
  0x8b   :  { %v622_v27 = vsel %vm72_vm2, 1.0, %v763_v22  ;;  %v155_v28 = vand.u32 4294901760, %v154_v25 }
  0x8c   :  { %v84_v29 = vsel %vm79_vm0, %v622_v27, 0 }
  0x8d   :  { %v164_v30 = vsub.f32 %v84_v29, %v84_v29  ;;  %679 = vmatprep.mubr.f32.mxu0 %v155_v28  ;;  %v156_v31 = vsub.f32 %v154_v25, %v155_v28 }
  0x8f   :  { %v157_v32 = vand.u32 4294901760, %v156_v31  ;;  %v165_v33 = vand.u32 4294901760, %v164_v30 }
  0x91   :  { %658 = vmatprep.mubr.f32.mxu1 %v157_v32  ;;  %680 = vmatmul.mubr.f32.vlgmr.msra.gmra.mrb[0].mxu0 %v165_v33  ;;  %v166_v34 = vsub.f32 %v164_v30, %v165_v33 }
  0x92   :  { %686 = vmatprep.mubr.msk.f32.mxu0 %vm79_vm0, %v621_v23  ;;  %715 = vmatpush3.bf16.msra.mxu0 %v712_v14 }
  0x93   :  { %v167_v35 = vand.u32 4294901760, %v166_v34  ;;  %717 = vmatprep.subr.bf16.mxu0 %v696_v7 }
  0x95   :  { %659 = vmatmul.mubr.f32.vlgmr.msra.gmra.mrb[0].mxu1 %v167_v35 }
  0x96   :  { %703 = vmatpush3.bf16.msra.mxu1 %v700_v17  ;;  %665 = vmatprep.mubr.msk.f32.mxu1 %vm79_vm0, %v621_v23 }
  0x97   :  { %705 = vmatprep.subr.bf16.mxu1 %v704_v18 }
  0x99   :  { %687 = vmatmul.mubr.msk.f32.vlgmr.msra.gmra.mrb[0].mxu0 %vm79_vm0, %v622_v27 }
  0x9a   :  { %693 = vmatprep.mubr.msk.f32.mxu0 %vm79_vm0, %v621_v23  ;;  %719 = vmatpush3.bf16.msra.mxu0 %v696_v7 }
  0x9d   :  { %666 = vmatmul.mubr.msk.f32.vlgmr.msra.gmra.mrb[0].mxu1 %vm79_vm0, %v622_v27 }
  0x9e   :  { %707 = vmatpush3.bf16.msra.mxu1 %v704_v18  ;;  %672 = vmatprep.mubr.f32.mxu1 %v154_v25 }
  0xa1   :  { %694 = vmatmul.mubr.msk.f32.vlgmr.msra.gmra.mrb[0].mxu0 %vm79_vm0, %v622_v27 }
  0xa5   :  { %673 = vmatmul.mubr.f32.vlgmr.msra.gmra.mrb[0].mxu1 %v164_v30 }
 0x174   :  { %v695_v36 = vpop.f32.mrb[0].mxu0 }
 0x175   :  { %v578_v37 = vpop.f32.mrb[1].mxu0 }
 0x178   :  { %v674_v38 = vpop.f32.mrb[0].mxu1 }
 0x179   :  { %v720_v39 = vadd.f32 %v695_v36, %v674_v38  ;;  %v332_v40 = vpop.f32.mrb[1].mxu1 }
 0x17a   :  { %v721_v41 = vadd.f32 %v578_v37, %v332_v40 }
 0x17b   :  { %590 = vst.msk [vmem:[#allocation4 + $0x8] sm:$0xff] %vm588_vm3, %v720_v39 }
 0x17c   :  { %589 = vst.msk [vmem:[#allocation4] sm:$0xff] %vm588_vm3, %v721_v41 }
 0x17d   :  { %747 = shalt.err (!%p744_p4)
}
 0x17e   :  { %s748_s20 = scalar_lea.hbm %s816_s2, 256 }
 0x17f   :  { %p749_p5 = scmp.ne.s32.totalorder %s816_s2, %s748_s20  ;;  %p752_p6 = scmp.lt.u32.totalorder %s748_s20, %s816_s2 }
 0x181   :  { %p754_p7 = pnand %p752_p6, %p749_p5 }
 0x183   :  { %757 = shalt.err (!%p754_p7)
}
 0x184   :  { %s765_s25 = smov 128   ;;  %s766_s26 = smov 8  }
 0x185   :  { %602 = dma.vmem_to_hbm [thread:$0]  %s597_s1, 256, %s816_s2, [#allocation5], %s765_s25, %s765_s25, %s766_s26  }
 0x186   :  { %760 = dma.done.wait [#allocation5], 256  }
 0x187   :  { %761 = vsyncadd [#allocation5], 4294967040 }
 0x188   :  { %606 = vsyncpa [#allocation5], 1 }
 0x189   :  { %607 = vsyncmov [#allocation3] }
 0x18c   :  { %s608_s29 = vpop.sfrf %607 }
 0x18d   :  { %p629_p8 = scmp.ne.s32.totalorder %s608_s29, 0 }
 0x18f   :  { %612 = shalt.err (%p629_p8)  }

</bundles_post_ra>
